<compile_context>
chip_gen: v7x
topology: tpu7x:2x2x1
jax: 0.10.0
libtpu: 0.0.40
codegen_flags: <defaults>
</compile_context>

<pallas_src>
import jax
import jax.numpy as jnp
import numpy as np
from jax.experimental import pallas as pl
from jax.experimental.pallas import tpu as pltpu


def _identity_kernel(x_ref, o_ref):
    # Eval-mode dropout (p=0.5, training=False) is exactly the identity.
    o_ref[...] = x_ref[...]


def _pick_row_tile(cols: int, itemsize: int) -> int:
    # Keep ~4x tile bytes (input + output, each double-buffered) comfortably
    # below the smallest default scoped VMEM budget across v5e/v6e/v7x.
    budget_bytes = 12 << 20                      # per-tile byte budget
    max_rows = max(8, budget_bytes // max(1, cols * itemsize))
    return max(8, min(512, (max_rows // 8) * 8))


def model_forward(x1: jax.Array) -> jax.Array:
    rows, cols = x1.shape
    itemsize = jnp.dtype(x1.dtype).itemsize
    nbytes = rows * cols * itemsize

    tile = _pick_row_tile(cols, itemsize)
    if nbytes >= (4 << 20) and cols % 128 == 0 and rows % tile == 0:
        # Large input: row-tiled, lane-dense, software-pipelined copy.
        return pl.pallas_call(
            _identity_kernel,
            out_shape=jax.ShapeDtypeStruct((rows, cols), x1.dtype),
            grid=(rows // tile,),
            in_specs=[pl.BlockSpec((tile, cols), lambda i: (i, 0))],
            out_specs=pl.BlockSpec((tile, cols), lambda i: (i, 0)),
            input_output_aliases={0: 0},
            compiler_params=pltpu.CompilerParams(
                dimension_semantics=("parallel",),   # lets v7x use both TCs
                vmem_limit_bytes=64 << 20,
            ),
        )(x1)

    # Small input (the spec's (1, 2)): single full-array block, no grid
    # (no redundant loop nest), output aliased onto the input buffer.
    # NOTE: at this size the Pallas call is pure launch overhead; callers who
    # do not need a kernel boundary should simply return x1.
    return pl.pallas_call(
        _identity_kernel,
        out_shape=jax.ShapeDtypeStruct((rows, cols), x1.dtype),
        input_output_aliases={0: 0},
    )(x1)


if __name__ == "__main__":
    key = jax.random.PRNGKey(0)
    # Matches the reference script's x1 = torch.randn(1, 2)
    x1 = jax.random.normal(key, (1, 2), dtype=jnp.float32)
    # Keep a host-side copy for the correctness check (output aliases input).
    x1_expected = np.asarray(x1).copy()

    out = jax.block_until_ready(model_forward(x1))

    # Sanity: eval-mode dropout is the identity.
    assert out.shape == x1_expected.shape
    assert np.allclose(np.asarray(out), x1_expected), "eval-mode dropout must be identity"

    print("KERNEL_OK")
</pallas_src>

<mosaic_0001>
module attributes {stable_mosaic.version = 11 : i64} {
  func.func @_identity_kernel(%arg0: memref<1x2xf32, #tpu.memory_space<vmem>>, %arg1: memref<1x2xf32, #tpu.memory_space<vmem>>) attributes {dimension_semantics = [], scalar_prefetch = 0 : i64, scratch_operands = 0 : i64, tpu.core_type = #tpu.core_type<tc>} {
    %c0 = arith.constant 0 : index
    %c0_0 = arith.constant 0 : index
    %0 = vector.load %arg0[%c0, %c0_0] : memref<1x2xf32, #tpu.memory_space<vmem>>, vector<1x2xf32>
    %c0_1 = arith.constant 0 : index
    %c0_2 = arith.constant 0 : index
    %1 = vector.load %arg1[%c0_1, %c0_2] : memref<1x2xf32, #tpu.memory_space<vmem>>, vector<1x2xf32>
    tpu.vector_store %arg1[%c0_1, %c0_2], %0 {strides = array<i32>} : memref<1x2xf32, #tpu.memory_space<vmem>>, vector<1x2xf32>,
    return
  }
}

</mosaic_0001>

<bundles_post_ra>
// kernel: tpu_custom_call.1
= control target key start
LH: loop header
LB: loop body
LE: loop exit
PB: predicated region body
PF: predicated region fallthrough
CT: control target
= control target key end

     0   :  { %6 = vsyncpa [#allocation3], 0  ;;  %s125_s0 = inlined_call_operand.hbm [shape: f32[1,2], index: 0, kind: input, shape index: {}, may-alias: {0,1}]   ;;  %s126_s1 = inlined_call_operand.hbm [shape: f32[1,2], index: 1, kind: output, shape index: {}, may-alias: {0,1}]  }
   0x1   :  { %7 = vsyncpa [#allocation4], 0  ;;  %s89_s6 = smov [#allocation2]   ;;  %s41_s10 = scalar_lea.hbm %s125_s0, 16 }
   0x2   :  { %s14_s7 = sshll.u32 %s89_s6, 4  ;;  %p42_p0 = scmp.ne.s32.totalorder %s125_s0, %s41_s10  ;;  %s15_s7 = int_to_ptr.vmem [resolvable:$true] %s14_s7 }
   0x3   :  { %p45_p1 = scmp.lt.u32.totalorder %s41_s10, %s125_s0 }
   0x5   :  { %p47_p2 = pnand %p45_p1, %p42_p0 }
   0x7   :  { %50 = shalt.err (!%p47_p2)
}
   0x8   :  { %s51_s15 = scalar_lea.vmem %s15_s7, 16  ;;  %s55_s16 = scalar_lea.vmem %s15_s7, 32 }
   0x9   :  { %p52_p3 = scmp.ne.s32.totalorder %s15_s7, %s51_s15  ;;  %p56_p4 = scmp.lt.s32.totalorder %s15_s7, %s15_s7 }
   0xa   :  { %p57_p5 = scmp.lt.s32.totalorder %s55_s16, %s51_s15 }
   0xc   :  { %p58_p6 = por %p57_p5, %p56_p4 }
   0xe   :  { %p59_p7 = pnand %p58_p6, %p52_p3 }
  0x10   :  { %62 = shalt.err (!%p59_p7)
}
  0x11   :  { %17 = dma.hbm_to_vmem [thread:$0]  %s125_s0, 16, %s15_s7, [#allocation3]  }
  0x12   :  { %85 = dma.done.wait [#allocation3], 16  }
  0x13   :  { %86 = vsyncadd [#allocation3], 4294967280  ;;  %s90_s19 = smov [#allocation5]   ;;  %vm22_vm0 = vcmask 8192   ;;  %v21_v0 = vld [vmem:[#allocation2] sm:$0x1] }
  0x14   :  { %s30_s20 = sshll.u32 %s90_s19, 4  ;;  %23 = vst.msk [vmem:[#allocation5] sm:$0x1] %vm22_vm0, %v21_v0  ;;  %s31_s20 = int_to_ptr.vmem [resolvable:$true] %s30_s20 }
  0x15   :  { %s63_s21 = scalar_lea.vmem %s31_s20, 16  ;;  %s67_s22 = scalar_lea.vmem %s31_s20, 32 }
  0x16   :  { %p64_p8 = scmp.ne.s32.totalorder %s31_s20, %s63_s21  ;;  %p68_p9 = scmp.lt.s32.totalorder %s31_s20, %s31_s20 }
  0x17   :  { %p69_p10 = scmp.lt.s32.totalorder %s67_s22, %s63_s21 }
  0x19   :  { %p70_p11 = por %p69_p10, %p68_p9 }
  0x1b   :  { %p71_p12 = pnand %p70_p11, %p64_p8 }
  0x1d   :  { %74 = shalt.err (!%p71_p12)
}
  0x1e   :  { %s75_s0 = scalar_lea.hbm %s126_s1, 16 }
  0x1f   :  { %p76_p13 = scmp.ne.s32.totalorder %s126_s1, %s75_s0  ;;  %p79_p0 = scmp.lt.u32.totalorder %s75_s0, %s126_s1 }
  0x21   :  { %p81_p1 = pnand %p79_p0, %p76_p13 }
  0x23   :  { %84 = shalt.err (!%p81_p1)
}
  0x24   :  { %33 = dma.vmem_to_hbm [thread:$0]  %s31_s20, 16, %s126_s1, [#allocation4]  }
  0x25   :  { %87 = dma.done.wait [#allocation4], 16  }
  0x26   :  { %88 = vsyncadd [#allocation4], 4294967280 }
  0x27   :  { %37 = vsyncpa [#allocation3], 1 }
  0x28   :  { %38 = vsyncpa [#allocation4], 1 }

</bundles_post_ra>
